<compile_context>
chip_gen: v7x
topology: tpu7x:2x2x1
jax: 0.10.0
libtpu: 0.0.40
codegen_flags: <defaults>
</compile_context>

<pallas_src>
import functools
import math

import jax
import jax.numpy as jnp
import numpy as np
from jax.experimental import pallas as pl
from jax.experimental.pallas import tpu as pltpu

_LOG_2PI = math.log(2.0 * math.pi)


# ---------------------------------------------------------------------------
# Pallas kernel: full MLP + fused heads + tanh-squash + log-prob for one batch
# tile in the transposed (features, batch) layout.  Weights/biases are
# VMEM-resident across grid steps.
# ---------------------------------------------------------------------------
def _actor_kernel(n_hidden, deterministic, with_logprob, *refs):
    # refs layout:
    #   [0]                 state tile           (state_dim, Bt)  f32
    #   [1 .. 2*n_hidden]   (w, b) per hidden layer; w:(out,in) b:(out,1)
    #   [next 2]            fused head weight (2A, hid), bias (2A, 1)
    #   [next 1, optional]  eps tile (A, Bt)     (stochastic path only)
    #   outputs:            a tile (A, Bt) [, logp tile (1, Bt)]
    idx = 0
    x_ref = refs[idx]; idx += 1

    # a_net: Linear + ReLU per layer (hidden AND output activations are ReLU)
    h = x_ref[...]
    for _ in range(n_hidden):
        w_ref, b_ref = refs[idx], refs[idx + 1]; idx += 2
        w = w_ref[...]                                   # (out, in), maybe bf16
        h = jnp.dot(w, h.astype(w.dtype),
                    preferred_element_type=jnp.float32) + b_ref[...]
        h = jnp.maximum(h, 0.0)

    # fused heads: one MXU pass produces [mu ; log_std] stacked on sublanes
    wh_ref, bh_ref = refs[idx], refs[idx + 1]; idx += 2
    wh = wh_ref[...]
    heads = jnp.dot(wh, h.astype(wh.dtype),
                    preferred_element_type=jnp.float32) + bh_ref[...]
    A = heads.shape[0] // 2
    mu = heads[:A, :]
    log_std = jnp.clip(heads[A:, :], -20.0, 2.0)

    if deterministic:
        eps = None
        u = mu                                           # no exp(log_std) issued
    else:
        eps_ref = refs[idx]; idx += 1
        eps = eps_ref[...]
        std = jnp.exp(log_std)
        u = mu + std * eps                               # reparameterized sample

    a_ref = refs[idx]; idx += 1

    if with_logprob:
        logp_ref = refs[idx]
        # Share the single transcendental t = exp(-2|u|) between tanh and
        # softplus (exact identities, single EUP pass):
        #   tanh(u)       = sign(u) * (1 - t) / (1 + t)
        #   softplus(-2u) = max(-2u, 0) + log1p(t)
        t = jnp.exp(-jnp.abs(2.0 * u))
        sign_u = jnp.where(u >= 0.0, 1.0, -1.0)          # (1-t)=0 at u=0, so sign(0) moot
        a_ref[...] = sign_u * (1.0 - t) / (1.0 + t)

        # Normal(mu, std).log_prob(u) with z = (u - mu)/std substituted exactly:
        #   z = eps (stochastic) or z = 0 (deterministic) -> no per-element divide.
        if deterministic:
            log_prob = -log_std - 0.5 * _LOG_2PI
        else:
            log_prob = -0.5 * eps * eps - log_std - 0.5 * _LOG_2PI
        softplus_neg2u = jnp.maximum(-2.0 * u, 0.0) + jnp.log1p(t)
        corr = 2.0 * (math.log(2.0) - u - softplus_neg2u)
        # lane-dense (1, Bt) output: reduce over the feature (sublane) axis
        logp_ref[...] = jnp.sum(log_prob - corr, axis=0, keepdims=True)
    else:
        a_ref[...] = jnp.tanh(u)


# ---------------------------------------------------------------------------
# Batch-tile selection: big tiles to amortize per-step overhead, >= 2 tiles
# for large B (v7x 2-TC sharding), lane-aligned when multi-tile.
# ---------------------------------------------------------------------------
def _select_batch_tile(B, requested):
    if requested is None:
        if B <= 512:
            return B                                # single tile, lane dim = full B
        tile = min(4096, pl.cdiv(B, 2))             # at least 2 tiles for v7x
    else:
        tile = max(1, min(int(requested), B))
    if tile >= B:
        return B
    tile = ((tile + 127) // 128) * 128              # lane alignment for multi-tile
    return B if tile >= B else tile


# ---------------------------------------------------------------------------
# Wrapper: builds the pallas_call (grid over batch, resident weights).
# Input/output keep the PyTorch orientation (B, feat); transposition to the
# lane-dense layout happens at the boundary.
# ---------------------------------------------------------------------------
def actor_forward(params, state, eps=None, *, deterministic, with_logprob,
                  batch_tile=None, mxu_bf16=True):
    hidden = params["hidden"]                        # [(w (out,in), b (out,1)), ...]
    w_heads, b_heads = params["w_heads"], params["b_heads"]   # (2A, hid), (2A, 1)
    B, state_dim = state.shape
    A = w_heads.shape[0] // 2
    n_hidden = len(hidden)

    if not deterministic and eps is None:
        raise ValueError("eps is required on the stochastic path")

    batch_tile = _select_batch_tile(B, batch_tile)
    grid_n = pl.cdiv(B, batch_tile)
    b_pad = grid_n * batch_tile

    mat_dtype = jnp.bfloat16 if mxu_bf16 else jnp.float32

    # Transposed, lane-dense layout: (features, batch); pad batch to tile mult.
    x_t = jnp.transpose(state)
    if b_pad != B:
        x_t = jnp.pad(x_t, ((0, 0), (0, b_pad - B)))

    def stream_spec():
        return lambda i: (0, i)

    def resident(arr):
        return pl.BlockSpec(arr.shape, lambda i: (0, 0))

    args = [x_t]
    in_specs = [pl.BlockSpec((state_dim, batch_tile), stream_spec())]
    param_bytes = 0
    for (w, b) in hidden:
        w_c = w.astype(mat_dtype)                    # pre-cast once (bf16 MXU path)
        args += [w_c, b]
        in_specs += [resident(w_c), resident(b)]
        param_bytes += w.size * (2 if mxu_bf16 else 4) + b.size * 4
    wh_c = w_heads.astype(mat_dtype)
    args += [wh_c, b_heads]
    in_specs += [resident(wh_c), resident(b_heads)]
    param_bytes += w_heads.size * (2 if mxu_bf16 else 4) + b_heads.size * 4

    if not deterministic:
        eps_t = jnp.transpose(eps)
        if b_pad != B:
            eps_t = jnp.pad(eps_t, ((0, 0), (0, b_pad - B)))
        args.append(eps_t)
        in_specs.append(pl.BlockSpec((A, batch_tile), stream_spec()))

    out_shape = [jax.ShapeDtypeStruct((A, b_pad), jnp.float32)]
    out_specs = [pl.BlockSpec((A, batch_tile), stream_spec())]
    if with_logprob:
        out_shape.append(jax.ShapeDtypeStruct((1, b_pad), jnp.float32))
        out_specs.append(pl.BlockSpec((1, batch_tile), stream_spec()))

    # --- cost estimate (advisory) and VMEM budget -------------------------
    dims = [state_dim] + [w.shape[0] for (w, _) in hidden] + [2 * A]
    mm_flops = 2 * b_pad * sum(di * do for di, do in zip(dims[:-1], dims[1:]))
    trans_per_elem = (0 if deterministic else 1) + (2 if with_logprob else 1)
    stream_cols = (state_dim + A + (0 if deterministic else A)
                   + (1 if with_logprob else 0))
    io_bytes = 4 * b_pad * stream_cols
    cost = pl.CostEstimate(flops=int(mm_flops),
                           transcendentals=int(b_pad * A * trans_per_elem),
                           bytes_accessed=int(io_bytes + param_bytes))
    # Double-buffered streamed tiles + resident params, generous headroom,
    # floor at v5e's 16 MiB scoped default, cap well below v7x physical VMEM.
    vmem_est = 2 * (4 * batch_tile * stream_cols + param_bytes)
    vmem_limit = int(min(48 * 2**20, max(16 * 2**20, 4 * vmem_est)))

    kernel = functools.partial(_actor_kernel, n_hidden, deterministic,
                               with_logprob)

    outs = pl.pallas_call(
        kernel,
        out_shape=out_shape,
        grid=(grid_n,),
        in_specs=in_specs,
        out_specs=out_specs,
        compiler_params=pltpu.CompilerParams(
            dimension_semantics=("parallel",),       # megacore-shardable batch axis
            vmem_limit_bytes=vmem_limit),
        cost_estimate=cost,
    )(*args)

    a = jnp.transpose(outs[0][:, :B])                # (B, A)
    logp = jnp.transpose(outs[1][:, :B]) if with_logprob else None   # (B, 1)
    return a, logp


# ---------------------------------------------------------------------------
# Deterministic parameter init mimicking torch.nn.Linear defaults
# (uniform(-1/sqrt(fan_in), +1/sqrt(fan_in))).  Weights stored as (out, in),
# biases as (out, 1).  The two head layers are concatenated ONCE into a fused
# (2A, hid) weight / (2A, 1) bias (mu rows first, log_std rows second).
# ---------------------------------------------------------------------------
def init_actor_params(key, state_dim, action_dim, hid_shape):
    dims = [state_dim] + list(hid_shape)

    def linear(key, fan_in, fan_out):
        kw, kb = jax.random.split(key)
        bound = 1.0 / math.sqrt(fan_in)
        w = jax.random.uniform(kw, (fan_out, fan_in), jnp.float32, -bound, bound)
        b = jax.random.uniform(kb, (fan_out, 1), jnp.float32, -bound, bound)
        return w, b

    hidden = []
    for j in range(len(dims) - 1):
        key, sub = jax.random.split(key)
        hidden.append(linear(sub, dims[j], dims[j + 1]))

    key, kmu, kls = jax.random.split(key, 3)
    wmu, bmu = linear(kmu, dims[-1], action_dim)
    wls, bls = linear(kls, dims[-1], action_dim)

    return {
        "hidden": hidden,
        "w_heads": jnp.concatenate([wmu, wls], axis=0),   # (2A, hid)
        "b_heads": jnp.concatenate([bmu, bls], axis=0),   # (2A, 1)
    }


# ---------------------------------------------------------------------------
# Pure-JAX reference (mirrors the PyTorch module; optionally casts matmul
# operands to bf16 at the same points as the kernel for like-for-like checks).
# ---------------------------------------------------------------------------
def ref_forward(params, x, e, deterministic, with_logprob, mxu_bf16=True):
    mat_dtype = jnp.bfloat16 if mxu_bf16 else jnp.float32

    def linear(h, w, b):
        return jnp.dot(h.astype(mat_dtype), w.T.astype(mat_dtype),
                       preferred_element_type=jnp.float32) + b.reshape(1, -1)

    h = x
    for (w, b) in params["hidden"]:
        h = jnp.maximum(linear(h, w, b), 0.0)
    heads = linear(h, params["w_heads"], params["b_heads"])
    A = heads.shape[1] // 2
    mu = heads[:, :A]
    log_std = jnp.clip(heads[:, A:], -20.0, 2.0)
    std = jnp.exp(log_std)
    u = mu if deterministic else mu + std * e
    a = jnp.tanh(u)
    if not with_logprob:
        return a, None
    z = (u - mu) / std
    lp = -0.5 * z * z - log_std - 0.5 * _LOG_2PI
    corr = 2.0 * (math.log(2.0) - u - jax.nn.softplus(-2.0 * u))
    return a, jnp.sum(lp - corr, axis=1, keepdims=True)


if __name__ == "__main__":
    # Small shapes consistent with the module: state_dim=16, hid=(32,32), act=8
    B, STATE_DIM, ACTION_DIM = 8, 16, 8
    HID_SHAPE = (32, 32)

    root = jax.random.PRNGKey(0)
    k_params, k_state, k_eps, k_state2, k_eps2, k_state3, k_eps3 = \
        jax.random.split(root, 7)

    params = init_actor_params(k_params, STATE_DIM, ACTION_DIM, HID_SHAPE)
    state = jax.random.normal(k_state, (B, STATE_DIM), jnp.float32)
    eps = jax.random.normal(k_eps, (B, ACTION_DIM), jnp.float32)   # rsample noise

    # 1) Stochastic path with log-prob, f32 MXU (tight correctness check)
    a, logp = actor_forward(params, state, eps, deterministic=False,
                            with_logprob=True, mxu_bf16=False)
    jax.block_until_ready(a); jax.block_until_ready(logp)
    a_ref, logp_ref = ref_forward(params, state, eps, False, True, mxu_bf16=False)
    np.testing.assert_allclose(np.asarray(a), np.asarray(a_ref),
                               rtol=1e-5, atol=1e-5)
    np.testing.assert_allclose(np.asarray(logp), np.asarray(logp_ref),
                               rtol=1e-4, atol=1e-4)

    # 2) Stochastic path with log-prob, default bf16 MXU (perf path)
    a_bf, logp_bf = actor_forward(params, state, eps, deterministic=False,
                                  with_logprob=True)
    jax.block_until_ready(a_bf); jax.block_until_ready(logp_bf)
    a_bf_ref, logp_bf_ref = ref_forward(params, state, eps, False, True,
                                        mxu_bf16=True)
    np.testing.assert_allclose(np.asarray(a_bf), np.asarray(a_bf_ref),
                               rtol=2e-3, atol=2e-3)
    np.testing.assert_allclose(np.asarray(logp_bf), np.asarray(logp_bf_ref),
                               rtol=1e-2, atol=1e-2)

    # 3) Deterministic path without log-prob (no eps DMA at all), f32
    a_det, logp_none = actor_forward(params, state, deterministic=True,
                                     with_logprob=False, mxu_bf16=False)
    jax.block_until_ready(a_det)
    assert logp_none is None
    a_det_ref, _ = ref_forward(params, state, eps, True, False, mxu_bf16=False)
    np.testing.assert_allclose(np.asarray(a_det), np.asarray(a_det_ref),
                               rtol=1e-5, atol=1e-5)

    # 4) Deterministic path WITH log-prob, f32
    a_dl, logp_dl = actor_forward(params, state, deterministic=True,
                                  with_logprob=True, mxu_bf16=False)
    jax.block_until_ready(a_dl); jax.block_until_ready(logp_dl)
    a_dl_ref, logp_dl_ref = ref_forward(params, state, eps, True, True,
                                        mxu_bf16=False)
    np.testing.assert_allclose(np.asarray(a_dl), np.asarray(a_dl_ref),
                               rtol=1e-5, atol=1e-5)
    np.testing.assert_allclose(np.asarray(logp_dl), np.asarray(logp_dl_ref),
                               rtol=1e-4, atol=1e-4)

    # 5) Larger batch, NOT a tile multiple: multi-tile grid + batch padding
    B2, TILE2 = 300, 128
    state2 = jax.random.normal(k_state2, (B2, STATE_DIM), jnp.float32)
    eps2 = jax.random.normal(k_eps2, (B2, ACTION_DIM), jnp.float32)
    a2, logp2 = actor_forward(params, state2, eps2, deterministic=False,
                              with_logprob=True, batch_tile=TILE2)
    jax.block_until_ready(a2); jax.block_until_ready(logp2)
    a2_ref, logp2_ref = ref_forward(params, state2, eps2, False, True,
                                    mxu_bf16=True)
    np.testing.assert_allclose(np.asarray(a2), np.asarray(a2_ref),
                               rtol=2e-3, atol=2e-3)
    np.testing.assert_allclose(np.asarray(logp2), np.asarray(logp2_ref),
                               rtol=1e-2, atol=1e-2)

    # 6) Large batch with automatic tile selection (>= 2 tiles for v7x)
    B3 = 1024
    state3 = jax.random.normal(k_state3, (B3, STATE_DIM), jnp.float32)
    eps3 = jax.random.normal(k_eps3, (B3, ACTION_DIM), jnp.float32)
    a3, logp3 = actor_forward(params, state3, eps3, deterministic=False,
                              with_logprob=True)
    jax.block_until_ready(a3); jax.block_until_ready(logp3)
    a3_ref, logp3_ref = ref_forward(params, state3, eps3, False, True,
                                    mxu_bf16=True)
    np.testing.assert_allclose(np.asarray(a3), np.asarray(a3_ref),
                               rtol=2e-3, atol=2e-3)
    np.testing.assert_allclose(np.asarray(logp3), np.asarray(logp3_ref),
                               rtol=1e-2, atol=1e-2)

    print("KERNEL_OK")
</pallas_src>

<mosaic_0001>
module attributes {stable_mosaic.version = 11 : i64} {
  func.func @_actor_kernel(%arg0: i32, %arg1: memref<16x8xf32, #tpu.memory_space<vmem>>, %arg2: memref<32x16xf32, #tpu.memory_space<vmem>>, %arg3: memref<32x1xf32, #tpu.memory_space<vmem>>, %arg4: memref<32x32xf32, #tpu.memory_space<vmem>>, %arg5: memref<32x1xf32, #tpu.memory_space<vmem>>, %arg6: memref<16x32xf32, #tpu.memory_space<vmem>>, %arg7: memref<16x1xf32, #tpu.memory_space<vmem>>, %arg8: memref<8x8xf32, #tpu.memory_space<vmem>>, %arg9: memref<8x8xf32, #tpu.memory_space<vmem>>, %arg10: memref<1x8xf32, #tpu.memory_space<vmem>>) attributes {dimension_semantics = [#tpu.dimension_semantics<parallel>], iteration_bounds = array<i64: 1>, scalar_prefetch = 0 : i64, scratch_operands = 0 : i64, tpu.core_type = #tpu.core_type<tc>, window_params = [{transform_indices = @transform_0, window_bounds = array<i64: 16, 8>}, {pipeline_mode = #tpu.pipeline_mode<synchronous>, transform_indices = @transform_1, window_bounds = array<i64: 32, 16>}, {pipeline_mode = #tpu.pipeline_mode<synchronous>, transform_indices = @transform_2, window_bounds = array<i64: 32, 1>}, {pipeline_mode = #tpu.pipeline_mode<synchronous>, transform_indices = @transform_3, window_bounds = array<i64: 32, 32>}, {pipeline_mode = #tpu.pipeline_mode<synchronous>, transform_indices = @transform_4, window_bounds = array<i64: 32, 1>}, {pipeline_mode = #tpu.pipeline_mode<synchronous>, transform_indices = @transform_5, window_bounds = array<i64: 16, 32>}, {pipeline_mode = #tpu.pipeline_mode<synchronous>, transform_indices = @transform_6, window_bounds = array<i64: 16, 1>}, {transform_indices = @transform_7, window_bounds = array<i64: 8, 8>}, {transform_indices = @transform_8, window_bounds = array<i64: 8, 8>}, {transform_indices = @transform_9, window_bounds = array<i64: 1, 8>}]} {
    %c0 = arith.constant 0 : index
    %c0_0 = arith.constant 0 : index
    %0 = vector.load %arg1[%c0, %c0_0] : memref<16x8xf32, #tpu.memory_space<vmem>>, vector<16x8xf32>
    %c0_1 = arith.constant 0 : index
    %c0_2 = arith.constant 0 : index
    %1 = vector.load %arg2[%c0_1, %c0_2] : memref<32x16xf32, #tpu.memory_space<vmem>>, vector<32x16xf32>
    %cst = arith.constant dense<0.000000e+00> : vector<32x8xf32>
    %2 = tpu.matmul %1, %0, %cst {dimension_numbers = #tpu.dot_dimension_numbers<[1], [0], [0], [1], [0, 0, 1, 1], [], []>} : vector<32x16xf32>, vector<16x8xf32>, vector<32x8xf32> -> vector<32x8xf32>
    %c0_3 = arith.constant 0 : index
    %c0_4 = arith.constant 0 : index
    %3 = vector.load %arg3[%c0_3, %c0_4] : memref<32x1xf32, #tpu.memory_space<vmem>>, vector<32x1xf32>
    %4 = vector.broadcast %3 : vector<32x1xf32> to vector<32x8xf32>
    %5 = arith.addf %2, %4 : vector<32x8xf32>
    %cst_5 = arith.constant 0.000000e+00 : f32
    %6 = vector.broadcast %cst_5 : f32 to vector<32x8xf32>
    %7 = arith.maximumf %5, %6 : vector<32x8xf32>
    %c0_6 = arith.constant 0 : index
    %c0_7 = arith.constant 0 : index
    %8 = vector.load %arg4[%c0_6, %c0_7] : memref<32x32xf32, #tpu.memory_space<vmem>>, vector<32x32xf32>
    %cst_8 = arith.constant dense<0.000000e+00> : vector<32x8xf32>
    %9 = tpu.matmul %8, %7, %cst_8 {dimension_numbers = #tpu.dot_dimension_numbers<[1], [0], [0], [1], [0, 0, 1, 1], [], []>} : vector<32x32xf32>, vector<32x8xf32>, vector<32x8xf32> -> vector<32x8xf32>
    %c0_9 = arith.constant 0 : index
    %c0_10 = arith.constant 0 : index
    %10 = vector.load %arg5[%c0_9, %c0_10] : memref<32x1xf32, #tpu.memory_space<vmem>>, vector<32x1xf32>
    %11 = vector.broadcast %10 : vector<32x1xf32> to vector<32x8xf32>
    %12 = arith.addf %9, %11 : vector<32x8xf32>
    %cst_11 = arith.constant 0.000000e+00 : f32
    %13 = vector.broadcast %cst_11 : f32 to vector<32x8xf32>
    %14 = arith.maximumf %12, %13 : vector<32x8xf32>
    %c0_12 = arith.constant 0 : index
    %c0_13 = arith.constant 0 : index
    %15 = vector.load %arg6[%c0_12, %c0_13] : memref<16x32xf32, #tpu.memory_space<vmem>>, vector<16x32xf32>
    %cst_14 = arith.constant dense<0.000000e+00> : vector<16x8xf32>
    %16 = tpu.matmul %15, %14, %cst_14 {dimension_numbers = #tpu.dot_dimension_numbers<[1], [0], [0], [1], [0, 0, 1, 1], [], []>} : vector<16x32xf32>, vector<32x8xf32>, vector<16x8xf32> -> vector<16x8xf32>
    %c0_15 = arith.constant 0 : index
    %c0_16 = arith.constant 0 : index
    %17 = vector.load %arg7[%c0_15, %c0_16] : memref<16x1xf32, #tpu.memory_space<vmem>>, vector<16x1xf32>
    %18 = vector.broadcast %17 : vector<16x1xf32> to vector<16x8xf32>
    %19 = arith.addf %16, %18 : vector<16x8xf32>
    %20 = vector.extract_strided_slice %19 {offsets = [0, 0], sizes = [8, 8], strides = [1, 1]} : vector<16x8xf32> to vector<8x8xf32>
    %21 = vector.extract_strided_slice %19 {offsets = [8, 0], sizes = [8, 8], strides = [1, 1]} : vector<16x8xf32> to vector<8x8xf32>
    %cst_17 = arith.constant -2.000000e+01 : f32
    %cst_18 = arith.constant 2.000000e+00 : f32
    %22 = vector.broadcast %cst_17 : f32 to vector<8x8xf32>
    %23 = arith.maximumf %22, %21 : vector<8x8xf32>
    %24 = vector.broadcast %cst_18 : f32 to vector<8x8xf32>
    %25 = arith.minimumf %24, %23 : vector<8x8xf32>
    %c0_19 = arith.constant 0 : index
    %c0_20 = arith.constant 0 : index
    %26 = vector.load %arg8[%c0_19, %c0_20] : memref<8x8xf32, #tpu.memory_space<vmem>>, vector<8x8xf32>
    %27 = math.exp %25 : vector<8x8xf32>
    %28 = arith.mulf %27, %26 : vector<8x8xf32>
    %29 = arith.addf %20, %28 : vector<8x8xf32>
    %cst_21 = arith.constant 2.000000e+00 : f32
    %30 = vector.broadcast %cst_21 : f32 to vector<8x8xf32>
    %31 = arith.mulf %30, %29 : vector<8x8xf32>
    %32 = math.absf %31 : vector<8x8xf32>
    %cst_22 = arith.constant 0.000000e+00 : f32
    %33 = vector.broadcast %cst_22 : f32 to vector<8x8xf32>
    %34 = arith.subf %33, %32 : vector<8x8xf32>
    %35 = math.exp %34 : vector<8x8xf32>
    %cst_23 = arith.constant 0.000000e+00 : f32
    %36 = vector.broadcast %cst_23 : f32 to vector<8x8xf32>
    %37 = arith.cmpf oge, %29, %36 : vector<8x8xf32>
    %cst_24 = arith.constant 1.000000e+00 : f32
    %cst_25 = arith.constant -1.000000e+00 : f32
    %38 = vector.broadcast %cst_24 : f32 to vector<8x8xf32>
    %39 = vector.broadcast %cst_25 : f32 to vector<8x8xf32>
    %40 = arith.select %37, %38, %39 : vector<8x8xi1>, vector<8x8xf32>
    %cst_26 = arith.constant 1.000000e+00 : f32
    %41 = vector.broadcast %cst_26 : f32 to vector<8x8xf32>
    %42 = arith.subf %41, %35 : vector<8x8xf32>
    %43 = arith.mulf %40, %42 : vector<8x8xf32>
    %cst_27 = arith.constant 1.000000e+00 : f32
    %44 = vector.broadcast %cst_27 : f32 to vector<8x8xf32>
    %45 = arith.addf %44, %35 : vector<8x8xf32>
    %46 = arith.divf %43, %45 : vector<8x8xf32>
    %c0_28 = arith.constant 0 : index
    %c0_29 = arith.constant 0 : index
    %47 = vector.load %arg9[%c0_28, %c0_29] : memref<8x8xf32, #tpu.memory_space<vmem>>, vector<8x8xf32>
    tpu.vector_store %arg9[%c0_28, %c0_29], %46 {strides = array<i32>} : memref<8x8xf32, #tpu.memory_space<vmem>>, vector<8x8xf32>,
    %cst_30 = arith.constant -5.000000e-01 : f32
    %48 = vector.broadcast %cst_30 : f32 to vector<8x8xf32>
    %49 = arith.mulf %48, %26 : vector<8x8xf32>
    %50 = arith.mulf %49, %26 : vector<8x8xf32>
    %51 = arith.subf %50, %25 : vector<8x8xf32>
    %cst_31 = arith.constant 0.918938517 : f32
    %52 = vector.broadcast %cst_31 : f32 to vector<8x8xf32>
    %53 = arith.subf %51, %52 : vector<8x8xf32>
    %cst_32 = arith.constant -2.000000e+00 : f32
    %54 = vector.broadcast %cst_32 : f32 to vector<8x8xf32>
    %55 = arith.mulf %54, %29 : vector<8x8xf32>
    %cst_33 = arith.constant 0.000000e+00 : f32
    %56 = vector.broadcast %cst_33 : f32 to vector<8x8xf32>
    %57 = arith.maximumf %55, %56 : vector<8x8xf32>
    %58 = math.log1p %35 : vector<8x8xf32>
    %59 = arith.addf %57, %58 : vector<8x8xf32>
    %cst_34 = arith.constant 0.693147182 : f32
    %60 = vector.broadcast %cst_34 : f32 to vector<8x8xf32>
    %61 = arith.subf %60, %29 : vector<8x8xf32>
    %62 = arith.subf %61, %59 : vector<8x8xf32>
    %cst_35 = arith.constant 2.000000e+00 : f32
    %63 = vector.broadcast %cst_35 : f32 to vector<8x8xf32>
    %64 = arith.mulf %63, %62 : vector<8x8xf32>
    %65 = arith.subf %53, %64 : vector<8x8xf32>
    %cst_36 = arith.constant dense<0.000000e+00> : vector<8xf32>
    %66 = vector.multi_reduction <add>, %65, %cst_36 [0] : vector<8x8xf32> to vector<8xf32>
    %67 = vector.shape_cast %66 : vector<8xf32> to vector<1x8xf32>
    %c0_37 = arith.constant 0 : index
    %c0_38 = arith.constant 0 : index
    %68 = vector.load %arg10[%c0_37, %c0_38] : memref<1x8xf32, #tpu.memory_space<vmem>>, vector<1x8xf32>
    tpu.vector_store %arg10[%c0_37, %c0_38], %67 {strides = array<i32>} : memref<1x8xf32, #tpu.memory_space<vmem>>, vector<1x8xf32>,
    return
  }
  func.func @transform_0(%arg0: i32) -> (i32, i32) {
    %c0_i32 = arith.constant 0 : i32
    %c0_i32_0 = arith.constant 0 : i32
    return %c0_i32, %arg0 : i32, i32
  }
  func.func @transform_1(%arg0: i32) -> (i32, i32) {
    %c0_i32 = arith.constant 0 : i32
    %c0_i32_0 = arith.constant 0 : i32
    %c0_i32_1 = arith.constant 0 : i32
    return %c0_i32, %c0_i32_0 : i32, i32
  }
  func.func @transform_2(%arg0: i32) -> (i32, i32) {
    %c0_i32 = arith.constant 0 : i32
    %c0_i32_0 = arith.constant 0 : i32
    %c0_i32_1 = arith.constant 0 : i32
    return %c0_i32, %c0_i32_0 : i32, i32
  }
  func.func @transform_3(%arg0: i32) -> (i32, i32) {
    %c0_i32 = arith.constant 0 : i32
    %c0_i32_0 = arith.constant 0 : i32
    %c0_i32_1 = arith.constant 0 : i32
    return %c0_i32, %c0_i32_0 : i32, i32
  }
  func.func @transform_4(%arg0: i32) -> (i32, i32) {
    %c0_i32 = arith.constant 0 : i32
    %c0_i32_0 = arith.constant 0 : i32
    %c0_i32_1 = arith.constant 0 : i32
    return %c0_i32, %c0_i32_0 : i32, i32
  }
  func.func @transform_5(%arg0: i32) -> (i32, i32) {
    %c0_i32 = arith.constant 0 : i32
    %c0_i32_0 = arith.constant 0 : i32
    %c0_i32_1 = arith.constant 0 : i32
    return %c0_i32, %c0_i32_0 : i32, i32
  }
  func.func @transform_6(%arg0: i32) -> (i32, i32) {
    %c0_i32 = arith.constant 0 : i32
    %c0_i32_0 = arith.constant 0 : i32
    %c0_i32_1 = arith.constant 0 : i32
    return %c0_i32, %c0_i32_0 : i32, i32
  }
  func.func @transform_7(%arg0: i32) -> (i32, i32) {
    %c0_i32 = arith.constant 0 : i32
    %c0_i32_0 = arith.constant 0 : i32
    return %c0_i32, %arg0 : i32, i32
  }
  func.func @transform_8(%arg0: i32) -> (i32, i32) {
    %c0_i32 = arith.constant 0 : i32
    %c0_i32_0 = arith.constant 0 : i32
    return %c0_i32, %arg0 : i32, i32
  }
  func.func @transform_9(%arg0: i32) -> (i32, i32) {
    %c0_i32 = arith.constant 0 : i32
    %c0_i32_0 = arith.constant 0 : i32
    return %c0_i32, %arg0 : i32, i32
  }
}

</mosaic_0001>

<bundles_post_ra>
// kernel: tpu_custom_call.1
= control target key start
LH: loop header
LB: loop body
LE: loop exit
PB: predicated region body
PF: predicated region fallthrough
CT: control target
= control target key end

     0   :  { %15 = vsyncpa [#allocation3], 0  ;;  %vm63_vm0 = vcmask 130048   ;;  %v616_v4 = vmov 0   ;;  %s781_s0 = inlined_call_operand.vmem [shape: f32[16,8], index: 0, kind: input, shape index: {}]   ;;  %s782_s1 = inlined_call_operand.vmem [shape: f32[32,16], index: 1, kind: input, shape index: {}]   ;;  %s783_s2 = inlined_call_operand.vmem [shape: f32[32,1], index: 2, kind: input, shape index: {}]   ;;  %s784_s3 = inlined_call_operand.vmem [shape: f32[32,32], index: 3, kind: input, shape index: {}]   ;;  %s785_s4 = inlined_call_operand.vmem [shape: f32[32,1], index: 4, kind: input, shape index: {}]   ;;  %s786_s5 = inlined_call_operand.vmem [shape: f32[16,32], index: 5, kind: input, shape index: {}]   ;;  %s787_s6 = inlined_call_operand.vmem [shape: f32[16,1], index: 6, kind: input, shape index: {}]   ;;  %s788_s7 = inlined_call_operand.vmem [shape: f32[8,8], index: 7, kind: input, shape index: {}]   ;;  %s789_s8 = inlined_call_operand.hbm [shape: f32[8,8], index: 8, kind: output, shape index: {0}]   ;;  %s790_s9 = inlined_call_operand.hbm [shape: f32[1,8], index: 9, kind: output, shape index: {1}]  }
   0x1   :  { %v33_v0 = vld [vmem:[%s781_s0] sm:$0xff]  ;;  %v34_v1 = vld [vmem:[%s781_s0 + $0x8] sm:$0xff]  ;;  %558 = vset.pattern.permute.xlu0 %v616_v4  ;;  %559 = vset.pattern.permute.xlu1 %v616_v4  ;;  %v41_v6 = vld [vmem:[%s783_s2 + $0x10] sm:$0xff] }
   0x2   :  { %v35_v2 = vld [vmem:[%s782_s1] sm:$0xff]  ;;  %v534_v3 = vpack.c.bf16 %v34_v1, %v33_v0  ;;  %v36_v7 = vld [vmem:[%s782_s1 + $0x8] sm:$0xff]  ;;  %55 = vperm.xlu1 %559, %v41_v6   ;;  %v37_v9 = vld [vmem:[%s782_s1 + $0x10] sm:$0xff] }
   0x3   :  { %503 = vmatprep.mubr.msk.f32.mxu0 %vm63_vm0, %v35_v2  ;;  %v39_v5 = vld [vmem:[%s783_s2] sm:$0xff]  ;;  %v40_v8 = vld [vmem:[%s783_s2 + $0x8] sm:$0xff]  ;;  %v42_v10 = vld [vmem:[%s783_s2 + $0x18] sm:$0xff] }
   0x4   :  { %535 = vmatprep.subr.bf16.mxu0 %v534_v3  ;;  %45 = vperm.xlu0 %558, %v39_v5  }
   0x5   :  { %537 = vmatpush3.bf16.msra.mxu0 %v534_v3 }
   0x6   :  { %16 = vsyncpa [#allocation5], 0  ;;  %v38_v11 = vld [vmem:[%s782_s1 + $0x18] sm:$0xff]  ;;  %60 = vperm.xlu1 %559, %v42_v10   ;;  %v169_v12 = vld [vmem:[%s785_s4] sm:$0xff]  ;;  %vm193_vm1 = vcmask 261120   ;;  %vm409_vm3 = vcmask 64512  }
   0x7   :  { %v170_v13 = vld [vmem:[%s785_s4 + $0x8] sm:$0xff]  ;;  %v171_v14 = vld [vmem:[%s785_s4 + $0x10] sm:$0xff]  ;;  %v172_v15 = vld [vmem:[%s785_s4 + $0x18] sm:$0xff] }
   0x8   :  { %504 = vmatmul.mubr.msk.f32.vlgmr.msra.gmra.mrb[0].mxu0 %vm63_vm0, %v36_v7  ;;  %50 = vperm.xlu0 %558, %v40_v8   ;;  %v298_v16 = vld [vmem:[%s787_s6 + $0x8] sm:$0xff]  ;;  %v297_v17 = vld [vmem:[%s787_s6] sm:$0xff]  ;;  %v167_v38 = vld [vmem:[%s784_s3 + $0x10] sm:$0xff] }
   0x9   :  { %506 = vmatprep.mubr.msk.f32.mxu0 %vm63_vm0, %v37_v9  ;;  %v165_v18 = vld [vmem:[%s784_s3] sm:$0xff]  ;;  %v166_v37 = vld [vmem:[%s784_s3 + $0x8] sm:$0xff]  ;;  %v168_v39 = vld [vmem:[%s784_s3 + $0x18] sm:$0xff] }
   0xa   :  { %180 = vperm.xlu1 %559, %v170_v13   ;;  %517 = vmatprep.mubr.msk.f32.mxu1 %vm193_vm1, %v165_v18  ;;  %v295_v40 = vld [vmem:[%s786_s5] sm:$0xff]  ;;  %v296_v59 = vld [vmem:[%s786_s5 + $0x8] sm:$0xff]  ;;  %v617_v18 = vmov -1.0   ;;  %s618_s5 = smov [#allocation2]  }
   0xb   :  { %v392_v5 = vld [vmem:[%s788_s7] sm:$0xff]  ;;  %s446_s7 = sshll.u32 %s618_s5, 4  ;;  %s447_s7 = int_to_ptr.vmem [resolvable:$true] %s446_s7 }
   0xc   :  { %507 = vmatmul.mubr.msk.f32.gmra.mrb[2].mxu0 %vm63_vm0, %v38_v11  ;;  %175 = vperm.xlu0 %558, %v169_v12   ;;  %s568_s27 = scalar_lea.vmem %s447_s7, 128  ;;  %p573_p1 = scmp.lt.s32.totalorder %s447_s7, %s447_s7 }
   0xd   :  { %531 = vmatprep.mubr.msk.f32.mxu0 %vm193_vm1, %v295_v40  ;;  %p569_p0 = scmp.ne.s32.totalorder %s447_s7, %s568_s27  ;;  %p574_p2 = scmp.lt.s32.totalorder %s568_s27, %s568_s27 }
   0xe   :  { %190 = vperm.xlu1 %559, %v172_v15  }
   0xf   :  { %p575_p3 = por %p574_p2, %p573_p1 }
  0x10   :  { %185 = vperm.xlu0 %558, %v171_v14  }
  0x11   :  { %p576_p4 = pnand %p575_p3, %p569_p0 }
  0x12   :  { %301 = vperm.xlu1 %559, %v297_v17   ;;  %v411_v17 = vmul.f32 -0.5, %v392_v5 }
  0x14   :  { %306 = vperm.xlu0 %558, %v298_v16  }
  0x81   :  { %v56_v20 = vpop.permute.xlu1 %55 }
  0x83   :  { %v46_v19 = vpop.permute.xlu0 %45 }
  0x85   :  { %v61_v27 = vpop.permute.xlu1 %60 }
  0x87   :  { %v51_v21 = vpop.permute.xlu0 %50 }
  0x89   :  { %v181_v41 = vpop.permute.xlu1 %180 }
  0x8b   :  { %v176_v42 = vpop.permute.xlu0 %175 }
  0x8d   :  { %v191_v48 = vpop.permute.xlu1 %190 }
  0x8f   :  { %v186_v51 = vpop.permute.xlu0 %185 }
  0x91   :  { %v302_v4 = vpop.permute.xlu1 %301 }
  0x93   :  { %v307_v60 = vpop.permute.xlu0 %306 }
  0xdb   :  { %v505_v22 = vpop.f32.mrb[0].mxu0 }
  0xdc   :  { %v148_v23 = vadd.f32 %v505_v22, %v51_v21  ;;  %v142_v24 = vpop.f32.mrb[1].mxu0 }
  0xdd   :  { %v143_v25 = vadd.f32 %v142_v24, %v46_v19 }
  0xde   :  { %v162_v26 = vmax.f32 %v148_v23, 0.0 }
  0xdf   :  { %v161_v28 = vmax.f32 %v143_v25, 0.0  ;;  %v508_v29 = vpop.f32.mrb[2].mxu0 }
  0xe0   :  { %v158_v30 = vadd.f32 %v508_v29, %v61_v27  ;;  %v152_v31 = vpop.f32.mrb[3].mxu0 }
  0xe1   :  { %v153_v32 = vadd.f32 %v152_v31, %v56_v20  ;;  %v538_v33 = vpack.c.bf16 %v162_v26, %v161_v28  ;;  %v412_v26 = vmul.f32 %v411_v17, %v392_v5 }
  0xe2   :  { %v164_v34 = vmax.f32 %v158_v30, 0.0 }
  0xe3   :  { %v163_v35 = vmax.f32 %v153_v32, 0.0  ;;  %539 = vmatprep.subr.bf16.mxu1 %v538_v33 }
  0xe4   :  { %541 = vmatpush3.bf16.msra.mxu1 %v538_v33 }
  0xe5   :  { %v542_v36 = vpack.c.bf16 %v164_v34, %v163_v35 }
  0xe7   :  { %543 = vmatprep.subr.bf16.mxu1 %v542_v36 }
  0xe8   :  { %545 = vmatpush3.bf16.msra.mxu1 %v542_v36 }
  0xeb   :  { %518 = vmatmul.mubr.msk.f32.vlgmr.msra.gmra.mrb[0].mxu1 %vm193_vm1, %v166_v37 }
  0xec   :  { %520 = vmatprep.mubr.msk.f32.mxu1 %vm193_vm1, %v167_v38 }
  0xef   :  { %521 = vmatmul.mubr.msk.f32.gmra.mrb[2].mxu1 %vm193_vm1, %v168_v39 }
 0x1be   :  { %v519_v43 = vpop.f32.mrb[0].mxu1 }
 0x1bf   :  { %v278_v44 = vadd.f32 %v519_v43, %v181_v41  ;;  %v272_v45 = vpop.f32.mrb[1].mxu1 }
 0x1c0   :  { %v273_v46 = vadd.f32 %v272_v45, %v176_v42 }
 0x1c1   :  { %v292_v47 = vmax.f32 %v278_v44, 0.0 }
 0x1c2   :  { %v291_v49 = vmax.f32 %v273_v46, 0.0  ;;  %v522_v50 = vpop.f32.mrb[2].mxu1 }
 0x1c3   :  { %v288_v52 = vadd.f32 %v522_v50, %v191_v48  ;;  %v282_v53 = vpop.f32.mrb[3].mxu1 }
 0x1c4   :  { %v546_v54 = vpack.c.bf16 %v292_v47, %v291_v49  ;;  %v283_v55 = vadd.f32 %v282_v53, %v186_v51 }
 0x1c5   :  { %v294_v56 = vmax.f32 %v288_v52, 0.0 }
 0x1c6   :  { %v293_v57 = vmax.f32 %v283_v55, 0.0  ;;  %547 = vmatprep.subr.bf16.mxu0 %v546_v54 }
 0x1c7   :  { %549 = vmatpush3.bf16.msra.mxu0 %v546_v54 }
 0x1c8   :  { %v550_v58 = vpack.c.bf16 %v294_v56, %v293_v57 }
 0x1ca   :  { %551 = vmatprep.subr.bf16.mxu0 %v550_v58 }
 0x1cb   :  { %553 = vmatpush3.bf16.msra.mxu0 %v550_v58 }
 0x1ce   :  { %532 = vmatmul.mubr.msk.f32.vlgmr.msra.gmra.mrb[4].mxu0 %vm193_vm1, %v296_v59 }
 0x2a1   :  { %v533_v61 = vpop.f32.mrb[4].mxu0 }
 0x2a2   :  { %v387_v62 = vadd.f32 %v533_v61, %v307_v60  ;;  %v381_v63 = vpop.f32.mrb[5].mxu0 }
 0x2a3   :  { %v382_v6 = vadd.f32 %v381_v63, %v302_v4 }
 0x2a4   :  { %v390_v0 = vmax.f32 %v387_v62, -20.0 }
 0x2a6   :  { %v391_v1 = vmin.f32 %v390_v0, 2.0 }
 0x2a8   :  { %v393_v2 = vmul.f32 1.442695, %v391_v1 }
 0x2aa   :  { %560 = vpow2.f32 %v393_v2 }
 0x2b4   :  { %v561_v3 = vpop.eup %560 }
 0x2b5   :  { %v395_v7 = vmul.f32 %v561_v3, %v392_v5 }
 0x2b7   :  { %v396_v8 = vadd.f32 %v395_v7, %v382_v6 }
 0x2b9   :  { %v397_v9 = vmul.f32 2.0, %v396_v8  ;;  %vm402_vm2 = vcmp.ge.f32.partialorder %v396_v8, 0.0  ;;  %v415_v21 = vmul.f32 -2.0, %v396_v8 }
 0x2ba   :  { %v403_v19 = vsel %vm402_vm2, 1.0, %v617_v18 }
 0x2bb   :  { %v398_v10 = vand.u32 2147483647, %v397_v9  ;;  %v416_v30 = vmax.f32 %v415_v21, 0.0 }
 0x2bd   :  { %v399_v11 = vsub.f32 0.0, %v398_v10 }
 0x2bf   :  { %v400_v12 = vmul.f32 1.442695, %v399_v11 }
 0x2c1   :  { %562 = vpow2.f32 %v400_v12 }
 0x2cb   :  { %v563_v13 = vpop.eup %562 }
 0x2cc   :  { %v406_v14 = vadd.f32 1.0, %v563_v13  ;;  %v420_v15 = vmul.f32 -0.5, %v563_v13  ;;  %v404_v16 = vsub.f32 1.0, %v563_v13  ;;  %v423_v23 = vand.u32 2147483647, %v563_v13 }
 0x2ce   :  { %564 = vrcp.f32 %v406_v14  ;;  %v421_v20 = vadd.f32 1.0, %v420_v15  ;;  %v405_v22 = vmul.f32 %v404_v16, %v403_v19  ;;  %vm750_vm4 = vcmp.lt.f32.partialorder %v423_v23, 0.0004427343 }
 0x2cf   :  { %566 = vlog2.f32 %v406_v14 }
 0x2d0   :  { %v422_v29 = vmul.f32 %v563_v13, %v421_v20 }
 0x2d8   :  { %v565_v24 = vpop.eup %564 }
 0x2d9   :  { %v567_v25 = vpop.eup %566  ;;  %v408_v27 = vmul.f32 %v565_v24, %v405_v22 }
 0x2da   :  { %v419_v28 = vmul.f32 0.6931472, %v567_v25 }
 0x2db   :  { %410 = vst.msk [vmem:[#allocation2] sm:$0xff] %vm409_vm3, %v408_v27 }
 0x2dc   :  { %v425_v32 = vsel %vm750_vm4, %v422_v29, %v419_v28 }
 0x2dd   :  { %579 = shalt.err (!%p576_p4)
}
 0x2de   :  { %s580_s30 = scalar_lea.hbm %s789_s8, 128 }
 0x2df   :  { %p581_p5 = scmp.ne.s32.totalorder %s789_s8, %s580_s30  ;;  %p584_p6 = scmp.lt.u32.totalorder %s580_s30, %s789_s8 }
 0x2e1   :  { %p586_p7 = pnand %p584_p6, %p581_p5 }
 0x2e3   :  { %589 = shalt.err (!%p586_p7)
}
 0x2e4   :  { %449 = dma.vmem_to_hbm [thread:$0]  %s447_s7, 128, %s789_s8, [#allocation3]   ;;  %v413_v33 = vsub.f32 %v412_v26, %v391_v1  ;;  %v426_v34 = vadd.f32 %v425_v32, %v416_v30  ;;  %v427_v35 = vsub.f32 0.6931472, %v396_v8  ;;  %vm438_vm5 = vcmask 57344  }
 0x2e5   :  { %s619_s14 = smov [#allocation4]  }
 0x2e6   :  { %v428_v36 = vsub.f32 %v427_v35, %v426_v34  ;;  %v478_v37 = vadd.f32 -0.9189385, %v413_v33  ;;  %s456_s15 = sshll.u32 %s619_s14, 4  ;;  %s457_s15 = int_to_ptr.vmem [resolvable:$true] %s456_s15 }
 0x2e7   :  { %s590_s8 = scalar_lea.vmem %s457_s15, 16  ;;  %s594_s16 = scalar_lea.vmem %s457_s15, 32 }
 0x2e8   :  { %v429_v38 = vmul.f32 2.0, %v428_v36  ;;  %p591_p8 = scmp.ne.s32.totalorder %s457_s15, %s590_s8  ;;  %p595_p9 = scmp.lt.s32.totalorder %s457_s15, %s457_s15 }
 0x2e9   :  { %p596_p10 = scmp.lt.s32.totalorder %s594_s16, %s590_s8 }
 0x2ea   :  { %v430_v39 = vsub.f32 %v478_v37, %v429_v38 }
 0x2eb   :  { %p597_p11 = por %p596_p10, %p595_p9 }
 0x2ec   :  { %v431_v40 = vsel %vm409_vm3, %v430_v39, 0.0 }
 0x2ed   :  { %v432_v41 = vrot.slane %v431_v40, 4  ;;  %p598_p12 = pnand %p597_p11, %p591_p8 }
 0x2ef   :  { %v433_v42 = vadd.f32 %v432_v41, %v431_v40 }
 0x2f1   :  { %v434_v43 = vrot.slane %v433_v42, 2 }
 0x2f3   :  { %v435_v44 = vadd.f32 %v434_v43, %v433_v42 }
 0x2f5   :  { %v436_v45 = vrot.slane %v435_v44, 1 }
 0x2f7   :  { %v437_v46 = vadd.f32 %v436_v45, %v435_v44 }
 0x2f9   :  { %439 = vst.msk [vmem:[#allocation4] sm:$0x1] %vm438_vm5, %v437_v46 }
 0x2fa   :  { %601 = shalt.err (!%p598_p12)
}
 0x2fb   :  { %s602_s4 = scalar_lea.hbm %s790_s9, 16 }
 0x2fc   :  { %p603_p13 = scmp.ne.s32.totalorder %s790_s9, %s602_s4  ;;  %p606_p0 = scmp.lt.u32.totalorder %s602_s4, %s790_s9 }
 0x2fe   :  { %p608_p1 = pnand %p606_p0, %p603_p13 }
 0x300   :  { %611 = shalt.err (!%p608_p1)
}
 0x301   :  { %459 = dma.vmem_to_hbm [thread:$0]  %s457_s15, 16, %s790_s9, [#allocation5]  }
 0x302   :  { %612 = dma.done.wait [#allocation3], 128  }
 0x303   :  { %613 = vsyncadd [#allocation3], 4294967168 }
 0x304   :  { %614 = dma.done.wait [#allocation5], 16  }
 0x305   :  { %615 = vsyncadd [#allocation5], 4294967280 }
 0x306   :  { %466 = vsyncpa [#allocation3], 1 }
 0x307   :  { %467 = vsyncpa [#allocation5], 1 }

</bundles_post_ra>
